<compile_context>
chip_gen: v6e
topology: v6e:2x2x1
jax: 0.10.0
libtpu: 0.0.40
codegen_flags: <defaults>
</compile_context>

<pallas_src>
import functools

import jax
import jax.numpy as jnp
from jax.experimental import pallas as pl
from jax.experimental.pallas import tpu as pltpu


# ---------------------------------------------------------------------------
# Kernel
# ---------------------------------------------------------------------------
def _sepconv_kernel(x_ref, wdw_ref, bdw_ref, wpw_ref, bpw_ref, out_ref, *scratch,
                    P, BC, use_mxu, use_roll, g_left):
    # x_ref  : (NB, C_in, L)       batch block of the input
    # wdw_ref: (K, C_in, 1)        depthwise weights (tap-major)
    # bdw_ref: (C_in, 1)           depthwise bias
    # wpw_ref: (C_out, C_in) [MXU] or (C_in, C_out, 1) [VPU]   pointwise weights
    # bpw_ref: (C_out, 1)          pointwise bias
    # out_ref: (NB, C_out, L_out)  batch block of the output
    # scratch: () on the roll path, or a single (BC, C_in, Lg) zero-guarded
    #          f32 VMEM buffer on the L % 128 != 0 fallback path.
    NB, C_in, L = x_ref.shape
    C_out, L_out = out_ref.shape[1], out_ref.shape[2]
    K = wdw_ref.shape[0]
    n_chunks = NB // BC

    bdw = bdw_ref[...][None]          # (1, C_in, 1)  f32
    bpw = bpw_ref[...][None]          # (1, C_out, 1) f32

    if use_roll:
        # Lane index within a row; one compare (sign of the tap shift is
        # static) replaces the old two-compare + and + select padding mask.
        pos = jax.lax.broadcasted_iota(jnp.int32, (1, 1, L), 2)
        xg_ref = None
    else:
        (xg_ref,) = scratch
        # Zero the guarded scratch once per grid step: the guard bands then
        # stand in for Conv1d's zero padding, so the K-tap loop below is pure
        # multiply-add.  Chunk staging only overwrites the data region, so the
        # guards stay zero across chunks.
        xg_ref[...] = jnp.zeros(xg_ref.shape, jnp.float32)

    def process_chunk(b0):
        xb = x_ref[pl.ds(b0, BC)].astype(jnp.float32)      # (BC, C_in, L)
        if not use_roll:
            xg_ref[:, :, g_left:g_left + L] = xb

        # Depthwise: y[b, c, l] = b_dw[c] + sum_k w_dw[c, k] * x[b, c, l+k-P]
        y = jnp.broadcast_to(bdw, (BC, C_in, L))
        for k in range(K):                 # K is small & static -> unrolled
            s = k - P                      # tap shift along the length axis
            wk = wdw_ref[k][None]          # (1, C_in, 1)
            if use_roll:
                if s == 0:
                    xs = xb
                else:
                    # XLU roll brings x[.., l+s] to column l; the wrapped
                    # columns are exactly the conv's zero padding, zeroed with
                    # a single compare + select.
                    xs = pltpu.roll(xb, shift=(-s) % L, axis=2)
                    if s > 0:
                        xs = jnp.where(pos < L - s, xs, 0.0)
                    else:
                        xs = jnp.where(pos >= -s, xs, 0.0)
            else:
                # Fallback for L % 128 != 0: static-offset window into the
                # zero-guarded scratch -- no masks needed at all.
                xs = xg_ref[:, :, g_left + s:g_left + s + L]
            y = y + xs * wk

        # Pointwise 1x1 conv.
        if use_mxu:
            # (C_out, C_in) @ (C_in, L) per batch element on the MXU.
            wpw = wpw_ref[...]
            rows = [jnp.dot(wpw, y[b], preferred_element_type=jnp.float32)
                    for b in range(BC)]
            out = jnp.stack(rows, axis=0) + bpw
        else:
            # Tiny contraction: VPU broadcast-FMA loop (the MXU would be
            # nearly empty at this depth and pays push/pop latency).
            out = jnp.broadcast_to(bpw, (BC, C_out, L))
            for ci in range(C_in):
                out = out + wpw_ref[ci][None] * y[:, ci:ci + 1, :]

        # Drop the (L - L_out) spill columns and store; block lane width equals
        # the full L_out so this is a plain (masked only if narrow) store.
        out_ref[pl.ds(b0, BC)] = out[:, :, :L_out].astype(out_ref.dtype)

    if n_chunks == 1:
        process_chunk(0)
    else:
        def chunk_step(c, carry):
            process_chunk(c * BC)
            return carry
        jax.lax.fori_loop(0, n_chunks, chunk_step, 0, unroll=n_chunks <= 8)


# ---------------------------------------------------------------------------
# Tiling heuristics
# ---------------------------------------------------------------------------
def _vmem_capacity_bytes():
    try:
        return int(pltpu.get_tpu_info().vmem_capacity_bytes)
    except Exception:
        return 64 * 1024 * 1024        # v7x-safe fallback (smallest VMEM)


def _mxu_min_contract_depth():
    """Generation-aware threshold: contraction depth (C_in) at which the
    pointwise matmul on the MXU beats the VPU broadcast-FMA loop."""
    try:
        kind = jax.devices()[0].device_kind.lower()
    except Exception:
        return 128
    if any(t in kind for t in ("v2", "v3", "v4", "v5 lite", "v5e", "v5p")):
        return 64                      # 128-deep MXUs
    return 128                         # 256-deep MXUs (v6e / v7x)


def _pick_batch_block(n, per_batch_bytes, vmem_cap):
    """Batch elements per grid step: fill ~4 MiB of in+out traffic per step
    (amortizes grid overhead and short DMAs), stay inside a double-buffered
    VMEM budget, and keep >= 2 grid steps when N allows (v7x: 2 TensorCores
    sharded over the 'parallel' batch axis)."""
    budget = (vmem_cap * 3) // 8                   # 2x double-buffered blocks
    nb_cap = max(budget // (2 * per_batch_bytes), 1)
    target = max((4 << 20) // per_batch_bytes, 1)
    divisors = [d for d in range(1, n + 1) if n % d == 0]
    fits = [d for d in divisors if d <= nb_cap] or [1]
    multi = [d for d in fits if d < n]
    pool = multi if multi else fits                # multi non-empty for n >= 2
    good = [d for d in pool if d <= target]
    return max(good) if good else min(pool)


def _pick_chunk(nb, per_batch_live_bytes):
    """Batch elements per inner-loop step: keep the live f32 intermediates
    (x, y, out) within a fraction of the 64-vreg file so nothing spills."""
    budget = 128 * 1024
    cap = max(budget // per_batch_live_bytes, 1)
    fits = [d for d in range(1, nb + 1) if nb % d == 0 and d <= cap]
    return max(fits) if fits else 1


# ---------------------------------------------------------------------------
# Wrapper
# ---------------------------------------------------------------------------
def separable_conv1d(x, w_dw, b_dw, w_pw, b_pw, *, padding=0):
    """x: (N, C_in, L); w_dw: (C_in, 1, K); b_dw: (C_in,);
    w_pw: (C_out, C_in, 1); b_pw: (C_out,). Returns (N, C_out, L_out)."""
    N, C_in, L = x.shape
    K = w_dw.shape[-1]
    C_out = w_pw.shape[0]

    # Rare corner (2*padding > K-1, i.e. output longer than input): materialize
    # that padding up front so the kernel's L-wide compute covers every output
    # column.  Typical configs ("same" or no padding) never take this branch.
    if 2 * padding > K - 1:
        x = jnp.pad(x, ((0, 0), (0, 0), (padding, padding)))
        L = L + 2 * padding
        padding = 0
    L_out = L + 2 * padding - K + 1
    assert L_out > 0, "invalid conv geometry"

    itemsize = jnp.dtype(x.dtype).itemsize
    rows_in = -(-C_in // 8) * 8
    rows_out = -(-C_out // 8) * 8
    cols = -(-L // 128) * 128
    cols_out = -(-L_out // 128) * 128

    vmem_cap = _vmem_capacity_bytes()
    per_batch_block = rows_in * cols * itemsize + rows_out * cols_out * itemsize
    NB = _pick_batch_block(N, per_batch_block, vmem_cap)
    per_batch_live = (2 * rows_in + rows_out) * cols * 4      # x + y + out (f32)
    BC = _pick_chunk(NB, per_batch_live)

    use_mxu = C_in >= _mxu_min_contract_depth()

    # Tiny weight re-layouts (tap-major depthwise, channel-major pointwise for
    # the VPU loop) -- negligible HBM traffic, done once outside the kernel.
    wdw3 = jnp.transpose(w_dw.reshape(C_in, K)).reshape(K, C_in, 1).astype(jnp.float32)
    bdw2 = b_dw.reshape(C_in, 1).astype(jnp.float32)
    if use_mxu:
        wpw2 = w_pw.reshape(C_out, C_in).astype(jnp.float32)
        wpw_spec = pl.BlockSpec((C_out, C_in), lambda i: (0, 0))
    else:
        wpw2 = jnp.transpose(w_pw.reshape(C_out, C_in)).reshape(C_in, C_out, 1)
        wpw2 = wpw2.astype(jnp.float32)
        wpw_spec = pl.BlockSpec((C_in, C_out, 1), lambda i: (0, 0, 0))
    bpw2 = b_pw.reshape(C_out, 1).astype(jnp.float32)

    def _call(use_roll):
        g_left = 0 if use_roll else ((padding + 127) // 128) * 128
        g_right = 0 if use_roll else max(K - 1 - padding, 0)
        scratch_shapes = ([] if use_roll
                          else [pltpu.VMEM((BC, C_in, g_left + L + g_right),
                                           jnp.float32)])
        kernel = functools.partial(
            _sepconv_kernel, P=padding, BC=BC, use_mxu=use_mxu,
            use_roll=use_roll, g_left=g_left)
        return pl.pallas_call(
            kernel,
            out_shape=jax.ShapeDtypeStruct((N, C_out, L_out), x.dtype),
            grid_spec=pltpu.PrefetchScalarGridSpec(
                num_scalar_prefetch=0,
                grid=(N // NB,),
                in_specs=[
                    pl.BlockSpec((NB, C_in, L), lambda i: (i, 0, 0)),
                    pl.BlockSpec((K, C_in, 1), lambda i: (0, 0, 0)),
                    pl.BlockSpec((C_in, 1), lambda i: (0, 0)),
                    wpw_spec,
                    pl.BlockSpec((C_out, 1), lambda i: (0, 0)),
                ],
                out_specs=pl.BlockSpec((NB, C_out, L_out), lambda i: (i, 0, 0)),
                scratch_shapes=scratch_shapes,
            ),
            compiler_params=pltpu.CompilerParams(
                dimension_semantics=("parallel",),
                # Generation-aware budget: blocks were capped at 3/8 of the
                # chip's VMEM, compiler limit at 1/2 (headroom for scratch).
                vmem_limit_bytes=vmem_cap // 2,
            ),
        )(x, wdw3, bdw2, wpw2, bpw2)

    if L % 128 == 0:
        try:
            return _call(True)            # roll path (no scratch, XLU shifts)
        except Exception:
            # Safety net: fall back to the guarded-scratch path if the roll
            # lowering is unavailable on this jax/libtpu combination.
            return _call(False)
    return _call(False)


# ---------------------------------------------------------------------------
# Pure-JAX reference (PyTorch Conv1d semantics), exact f32 op ordering.
# ---------------------------------------------------------------------------
def _reference(x, w_dw, b_dw, w_pw, b_pw, padding):
    N, C_in, L = x.shape
    K = w_dw.shape[-1]
    x_p = jnp.pad(x, ((0, 0), (0, 0), (padding, padding)))
    L_out = L + 2 * padding - K + 1
    y = jnp.zeros((N, C_in, L_out), jnp.float32) + b_dw[None, :, None]
    for k in range(K):
        y = y + x_p[:, :, k:k + L_out] * w_dw[:, 0, k][None, :, None]
    out = jnp.zeros((N, w_pw.shape[0], L_out), jnp.float32) + b_pw[None, :, None]
    for c in range(C_in):
        out = out + w_pw[:, c, 0][None, :, None] * y[:, c:c + 1, :]
    return out.astype(x.dtype)


if __name__ == "__main__":
    key = jax.random.PRNGKey(0)

    def run_case(N, C_in, C_out, L, K, P, case_key, integer=False):
        k1, k2, k3, k4, k5 = jax.random.split(case_key, 5)
        if integer:
            # Small-integer values keep the MXU pointwise path bit-exact vs.
            # the f32 reference regardless of the MXU's internal bf16 passes.
            def rnd(k, shape):
                return jax.random.randint(k, shape, -2, 3).astype(jnp.float32)
            x = rnd(k5, (N, C_in, L))
        else:
            def rnd(k, shape):
                return jax.random.uniform(k, shape, jnp.float32, -0.5, 0.5)
            x = jax.random.normal(k5, (N, C_in, L), jnp.float32)
        # Shapes follow nn.Conv1d:
        #   depthwise_conv.weight: (c_in, 1, K), bias: (c_in,)
        #   conv1d_1x1.weight:     (c_out, c_in, 1), bias: (c_out,)
        w_dw = rnd(k1, (C_in, 1, K))
        b_dw = rnd(k2, (C_in,))
        w_pw = rnd(k3, (C_out, C_in, 1))
        b_pw = rnd(k4, (C_out,))

        out = jax.block_until_ready(
            separable_conv1d(x, w_dw, b_dw, w_pw, b_pw, padding=P))
        ref = _reference(x, w_dw, b_dw, w_pw, b_pw, P)
        L_out = L + 2 * P - K + 1
        assert out.shape == (N, C_out, L_out), (out.shape, (N, C_out, L_out))
        assert jnp.allclose(out, ref, atol=1e-4, rtol=1e-4), \
            float(jnp.max(jnp.abs(out - ref)))

    keys = jax.random.split(key, 5)
    # Module-sized config ("same" padding): guarded-scratch path, grid=(2,).
    run_case(2, 4, 8, 16, 3, 1, keys[0])
    # padding=0 (module default): exercises L_out < L and the in-kernel crop.
    run_case(2, 4, 8, 16, 3, 0, keys[1])
    # Lane-aligned L: pltpu.roll path, BC=2 vectorized chunk, grid=(2,).
    run_case(4, 8, 8, 128, 3, 1, keys[2])
    # Fat batch block with an inner fori_loop over chunks (NB=4, BC=1).
    run_case(8, 8, 16, 1024, 3, 1, keys[3])
    # Large channel count: MXU pointwise path (integer inputs -> exact check).
    run_case(2, 128, 64, 128, 3, 1, keys[4], integer=True)

    print("KERNEL_OK")
</pallas_src>

<mosaic_0001>
module attributes {stable_mosaic.version = 11 : i64} {
  func.func @_sepconv_kernel(%arg0: i32, %arg1: memref<1x4x16xf32, #tpu.memory_space<vmem>>, %arg2: memref<3x4x1xf32, #tpu.memory_space<vmem>>, %arg3: memref<4x1xf32, #tpu.memory_space<vmem>>, %arg4: memref<4x8x1xf32, #tpu.memory_space<vmem>>, %arg5: memref<8x1xf32, #tpu.memory_space<vmem>>, %arg6: memref<1x8x16xf32, #tpu.memory_space<vmem>>, %arg7: memref<1x4x145xf32, #tpu.memory_space<vmem>>) attributes {dimension_semantics = [#tpu.dimension_semantics<parallel>], iteration_bounds = array<i64: 2>, scalar_prefetch = 0 : i64, scratch_operands = 1 : i64, tpu.core_type = #tpu.core_type<tc>, window_params = [{transform_indices = @transform_0, window_bounds = array<i64: 1, 4, 16>}, {pipeline_mode = #tpu.pipeline_mode<synchronous>, transform_indices = @transform_1, window_bounds = array<i64: 3, 4, 1>}, {pipeline_mode = #tpu.pipeline_mode<synchronous>, transform_indices = @transform_2, window_bounds = array<i64: 4, 1>}, {pipeline_mode = #tpu.pipeline_mode<synchronous>, transform_indices = @transform_3, window_bounds = array<i64: 4, 8, 1>}, {pipeline_mode = #tpu.pipeline_mode<synchronous>, transform_indices = @transform_4, window_bounds = array<i64: 8, 1>}, {transform_indices = @transform_5, window_bounds = array<i64: 1, 8, 16>}]} {
    %c0 = arith.constant 0 : index
    %c0_0 = arith.constant 0 : index
    %0 = vector.load %arg3[%c0, %c0_0] : memref<4x1xf32, #tpu.memory_space<vmem>>, vector<4x1xf32>
    %1 = vector.shape_cast %0 : vector<4x1xf32> to vector<1x4x1xf32>
    %c0_1 = arith.constant 0 : index
    %c0_2 = arith.constant 0 : index
    %2 = vector.load %arg5[%c0_1, %c0_2] : memref<8x1xf32, #tpu.memory_space<vmem>>, vector<8x1xf32>
    %3 = vector.shape_cast %2 : vector<8x1xf32> to vector<1x8x1xf32>
    %cst = arith.constant 0.000000e+00 : f32
    %4 = vector.broadcast %cst : f32 to vector<1x4x145xf32>
    %c0_3 = arith.constant 0 : index
    %c0_4 = arith.constant 0 : index
    %c0_5 = arith.constant 0 : index
    %5 = vector.load %arg7[%c0_3, %c0_4, %c0_5] : memref<1x4x145xf32, #tpu.memory_space<vmem>>, vector<1x4x145xf32>
    tpu.vector_store %arg7[%c0_3, %c0_4, %c0_5], %4 {strides = array<i32>} : memref<1x4x145xf32, #tpu.memory_space<vmem>>, vector<1x4x145xf32>,
    %c0_6 = arith.constant 0 : index
    %c0_7 = arith.constant 0 : index
    %c0_8 = arith.constant 0 : index
    %6 = vector.load %arg1[%c0_6, %c0_7, %c0_8] : memref<1x4x16xf32, #tpu.memory_space<vmem>>, vector<1x4x16xf32>
    %c0_9 = arith.constant 0 : index
    %c0_10 = arith.constant 0 : index
    %c128 = arith.constant 128 : index
    %7 = vector.load %arg7[%c0_9, %c0_10, %c128] : memref<1x4x145xf32, #tpu.memory_space<vmem>>, vector<1x4x16xf32>
    tpu.vector_store %arg7[%c0_9, %c0_10, %c128], %6 {strides = array<i32>} : memref<1x4x145xf32, #tpu.memory_space<vmem>>, vector<1x4x16xf32>,
    %8 = vector.shape_cast %1 : vector<1x4x1xf32> to vector<1x4x1xf32>
    %9 = vector.broadcast %8 : vector<1x4x1xf32> to vector<1x4x16xf32>
    %c0_11 = arith.constant 0 : index
    %c0_12 = arith.constant 0 : index
    %c0_13 = arith.constant 0 : index
    %10 = vector.load %arg2[%c0_11, %c0_12, %c0_13] : memref<3x4x1xf32, #tpu.memory_space<vmem>>, vector<1x4x1xf32>
    %11 = vector.shape_cast %10 : vector<1x4x1xf32> to vector<4x1xf32>
    %12 = vector.shape_cast %11 : vector<4x1xf32> to vector<1x4x1xf32>
    %c0_14 = arith.constant 0 : index
    %c0_15 = arith.constant 0 : index
    %c127 = arith.constant 127 : index
    %13 = vector.load %arg7[%c0_14, %c0_15, %c127] : memref<1x4x145xf32, #tpu.memory_space<vmem>>, vector<1x4x16xf32>
    %14 = vector.broadcast %12 : vector<1x4x1xf32> to vector<1x4x16xf32>
    %15 = arith.mulf %13, %14 : vector<1x4x16xf32>
    %16 = arith.addf %9, %15 : vector<1x4x16xf32>
    %c1 = arith.constant 1 : index
    %c0_16 = arith.constant 0 : index
    %c0_17 = arith.constant 0 : index
    %17 = vector.load %arg2[%c1, %c0_16, %c0_17] : memref<3x4x1xf32, #tpu.memory_space<vmem>>, vector<1x4x1xf32>
    %18 = vector.shape_cast %17 : vector<1x4x1xf32> to vector<4x1xf32>
    %19 = vector.shape_cast %18 : vector<4x1xf32> to vector<1x4x1xf32>
    %c0_18 = arith.constant 0 : index
    %c0_19 = arith.constant 0 : index
    %c128_20 = arith.constant 128 : index
    %20 = vector.load %arg7[%c0_18, %c0_19, %c128_20] : memref<1x4x145xf32, #tpu.memory_space<vmem>>, vector<1x4x16xf32>
    %21 = vector.broadcast %19 : vector<1x4x1xf32> to vector<1x4x16xf32>
    %22 = arith.mulf %20, %21 : vector<1x4x16xf32>
    %23 = arith.addf %16, %22 : vector<1x4x16xf32>
    %c2 = arith.constant 2 : index
    %c0_21 = arith.constant 0 : index
    %c0_22 = arith.constant 0 : index
    %24 = vector.load %arg2[%c2, %c0_21, %c0_22] : memref<3x4x1xf32, #tpu.memory_space<vmem>>, vector<1x4x1xf32>
    %25 = vector.shape_cast %24 : vector<1x4x1xf32> to vector<4x1xf32>
    %26 = vector.shape_cast %25 : vector<4x1xf32> to vector<1x4x1xf32>
    %c0_23 = arith.constant 0 : index
    %c0_24 = arith.constant 0 : index
    %c129 = arith.constant 129 : index
    %27 = vector.load %arg7[%c0_23, %c0_24, %c129] : memref<1x4x145xf32, #tpu.memory_space<vmem>>, vector<1x4x16xf32>
    %28 = vector.broadcast %26 : vector<1x4x1xf32> to vector<1x4x16xf32>
    %29 = arith.mulf %27, %28 : vector<1x4x16xf32>
    %30 = arith.addf %23, %29 : vector<1x4x16xf32>
    %31 = vector.shape_cast %3 : vector<1x8x1xf32> to vector<1x8x1xf32>
    %32 = vector.broadcast %31 : vector<1x8x1xf32> to vector<1x8x16xf32>
    %c0_25 = arith.constant 0 : index
    %c0_26 = arith.constant 0 : index
    %c0_27 = arith.constant 0 : index
    %33 = vector.load %arg4[%c0_25, %c0_26, %c0_27] : memref<4x8x1xf32, #tpu.memory_space<vmem>>, vector<1x8x1xf32>
    %34 = vector.shape_cast %33 : vector<1x8x1xf32> to vector<8x1xf32>
    %35 = vector.shape_cast %34 : vector<8x1xf32> to vector<1x8x1xf32>
    %36 = vector.extract_strided_slice %30 {offsets = [0, 0, 0], sizes = [1, 1, 16], strides = [1, 1, 1]} : vector<1x4x16xf32> to vector<1x1x16xf32>
    %37 = vector.broadcast %35 : vector<1x8x1xf32> to vector<1x8x16xf32>
    %38 = vector.broadcast %36 : vector<1x1x16xf32> to vector<1x8x16xf32>
    %39 = arith.mulf %37, %38 : vector<1x8x16xf32>
    %40 = arith.addf %32, %39 : vector<1x8x16xf32>
    %c1_28 = arith.constant 1 : index
    %c0_29 = arith.constant 0 : index
    %c0_30 = arith.constant 0 : index
    %41 = vector.load %arg4[%c1_28, %c0_29, %c0_30] : memref<4x8x1xf32, #tpu.memory_space<vmem>>, vector<1x8x1xf32>
    %42 = vector.shape_cast %41 : vector<1x8x1xf32> to vector<8x1xf32>
    %43 = vector.shape_cast %42 : vector<8x1xf32> to vector<1x8x1xf32>
    %44 = vector.extract_strided_slice %30 {offsets = [0, 1, 0], sizes = [1, 1, 16], strides = [1, 1, 1]} : vector<1x4x16xf32> to vector<1x1x16xf32>
    %45 = vector.broadcast %43 : vector<1x8x1xf32> to vector<1x8x16xf32>
    %46 = vector.broadcast %44 : vector<1x1x16xf32> to vector<1x8x16xf32>
    %47 = arith.mulf %45, %46 : vector<1x8x16xf32>
    %48 = arith.addf %40, %47 : vector<1x8x16xf32>
    %c2_31 = arith.constant 2 : index
    %c0_32 = arith.constant 0 : index
    %c0_33 = arith.constant 0 : index
    %49 = vector.load %arg4[%c2_31, %c0_32, %c0_33] : memref<4x8x1xf32, #tpu.memory_space<vmem>>, vector<1x8x1xf32>
    %50 = vector.shape_cast %49 : vector<1x8x1xf32> to vector<8x1xf32>
    %51 = vector.shape_cast %50 : vector<8x1xf32> to vector<1x8x1xf32>
    %52 = vector.extract_strided_slice %30 {offsets = [0, 2, 0], sizes = [1, 1, 16], strides = [1, 1, 1]} : vector<1x4x16xf32> to vector<1x1x16xf32>
    %53 = vector.broadcast %51 : vector<1x8x1xf32> to vector<1x8x16xf32>
    %54 = vector.broadcast %52 : vector<1x1x16xf32> to vector<1x8x16xf32>
    %55 = arith.mulf %53, %54 : vector<1x8x16xf32>
    %56 = arith.addf %48, %55 : vector<1x8x16xf32>
    %c3 = arith.constant 3 : index
    %c0_34 = arith.constant 0 : index
    %c0_35 = arith.constant 0 : index
    %57 = vector.load %arg4[%c3, %c0_34, %c0_35] : memref<4x8x1xf32, #tpu.memory_space<vmem>>, vector<1x8x1xf32>
    %58 = vector.shape_cast %57 : vector<1x8x1xf32> to vector<8x1xf32>
    %59 = vector.shape_cast %58 : vector<8x1xf32> to vector<1x8x1xf32>
    %60 = vector.extract_strided_slice %30 {offsets = [0, 3, 0], sizes = [1, 1, 16], strides = [1, 1, 1]} : vector<1x4x16xf32> to vector<1x1x16xf32>
    %61 = vector.broadcast %59 : vector<1x8x1xf32> to vector<1x8x16xf32>
    %62 = vector.broadcast %60 : vector<1x1x16xf32> to vector<1x8x16xf32>
    %63 = arith.mulf %61, %62 : vector<1x8x16xf32>
    %64 = arith.addf %56, %63 : vector<1x8x16xf32>
    %c0_36 = arith.constant 0 : index
    %c0_37 = arith.constant 0 : index
    %c0_38 = arith.constant 0 : index
    %65 = vector.load %arg6[%c0_36, %c0_37, %c0_38] : memref<1x8x16xf32, #tpu.memory_space<vmem>>, vector<1x8x16xf32>
    tpu.vector_store %arg6[%c0_36, %c0_37, %c0_38], %64 {strides = array<i32>} : memref<1x8x16xf32, #tpu.memory_space<vmem>>, vector<1x8x16xf32>,
    return
  }
  func.func @transform_0(%arg0: i32) -> (i32, i32, i32) {
    %c0_i32 = arith.constant 0 : i32
    %c0_i32_0 = arith.constant 0 : i32
    %c0_i32_1 = arith.constant 0 : i32
    return %arg0, %c0_i32, %c0_i32_0 : i32, i32, i32
  }
  func.func @transform_1(%arg0: i32) -> (i32, i32, i32) {
    %c0_i32 = arith.constant 0 : i32
    %c0_i32_0 = arith.constant 0 : i32
    %c0_i32_1 = arith.constant 0 : i32
    %c0_i32_2 = arith.constant 0 : i32
    return %c0_i32, %c0_i32_0, %c0_i32_1 : i32, i32, i32
  }
  func.func @transform_2(%arg0: i32) -> (i32, i32) {
    %c0_i32 = arith.constant 0 : i32
    %c0_i32_0 = arith.constant 0 : i32
    %c0_i32_1 = arith.constant 0 : i32
    return %c0_i32, %c0_i32_0 : i32, i32
  }
  func.func @transform_3(%arg0: i32) -> (i32, i32, i32) {
    %c0_i32 = arith.constant 0 : i32
    %c0_i32_0 = arith.constant 0 : i32
    %c0_i32_1 = arith.constant 0 : i32
    %c0_i32_2 = arith.constant 0 : i32
    return %c0_i32, %c0_i32_0, %c0_i32_1 : i32, i32, i32
  }
  func.func @transform_4(%arg0: i32) -> (i32, i32) {
    %c0_i32 = arith.constant 0 : i32
    %c0_i32_0 = arith.constant 0 : i32
    %c0_i32_1 = arith.constant 0 : i32
    return %c0_i32, %c0_i32_0 : i32, i32
  }
  func.func @transform_5(%arg0: i32) -> (i32, i32, i32) {
    %c0_i32 = arith.constant 0 : i32
    %c0_i32_0 = arith.constant 0 : i32
    %c0_i32_1 = arith.constant 0 : i32
    return %arg0, %c0_i32, %c0_i32_0 : i32, i32, i32
  }
}

</mosaic_0001>

<bundles_post_ra>
// kernel: tpu_custom_call.1
= control target key start
LH: loop header
LB: loop body
LE: loop exit
PB: predicated region body
PF: predicated region fallthrough
CT: control target
= control target key end

     0   :  { %10 = vsyncpa [#allocation4], 0  ;;  %s677_s0 = inlined_call_operand.vmem [shape: f32[2,4,16], index: 0, kind: input, shape index: {}]   ;;  %s678_s1 = inlined_call_operand.vmem [shape: f32[3,4,1], index: 1, kind: input, shape index: {}]   ;;  %s679_s2 = inlined_call_operand.vmem [shape: f32[4,1], index: 2, kind: input, shape index: {}]   ;;  %s680_s3 = inlined_call_operand.vmem [shape: f32[4,8,1], index: 3, kind: input, shape index: {}]   ;;  %s681_s4 = inlined_call_operand.vmem [shape: f32[8,1], index: 4, kind: input, shape index: {}]   ;;  %s682_s5 = inlined_call_operand.hbm [shape: f32[2,8,16], index: 5, kind: output, shape index: {}]  }
   0x1   :  { %12 = vsyncpa [#allocation4 + $0x1], 0  ;;  %s563_s18 = smov 0   ;;  %s565_s19 = smov 0  }
   0x2   :  { %s567_s20 = smov 0   ;;  %s569_s21 = smov 0  }
   0x3 LB: > { %s584_s22 = sadd.s32 4294967295, %s526_s21   ;;  %s406_s23 = sadd.s32 4294967294, %s526_s21   ;;  %s526_s21 = sphi %s569_s21, %s688_s21   ;;  %s522_s20 = sphi %s567_s20, %s687_s20   ;;  %s518_s19 = sphi %s565_s19, %s686_s19   ;;  %s514_s18 = sphi %s563_s18, %s685_s18  }
   0x4   : > { %s588_s24 = sadd.s32 1, %s526_s21   ;;  %s135_s25 = sadd.s32 1, %s522_s20 }
   0x5   : > { %s132_s26 = ssub.s32 %s526_s21, %s588_s24  ;;  %p145_p0 = scmp.ne.s32.totalorder %s522_s20, %s518_s19 }
   0x6   : > { %p133_p1 = scmp.eq.s32.totalorder %s132_s26, 0  ;;  %p146_p2 = scmp.eq.s32.totalorder %s584_s22, 1 }
   0x7   : > { %p151_p3 = scmp.ne.s32.totalorder %s518_s19, %s514_s18  ;;  %p152_p4 = scmp.eq.s32.totalorder %s406_s23, 1 }
   0x8   : > { %s599_s27 = scalar_select %p133_p1, %s522_s20, %s135_s25  }
   0x9   : > { %p601_p5 = por %p146_p2, %p145_p0  ;;  %p605_p6 = por %p152_p4, %p151_p3 }
   0xa   : > { %p409_p7 = scmp.ge.s32.totalorder %s526_s21, 1  ;;  %p189_p8 = scmp.lt.s32.totalorder %s526_s21, 3 }
   0xc   : > { %p190_p9 = pnand %p409_p7, %p189_p8 }
   0xd   : > { %p216_p10 = scmp.lt.s32.totalorder (!%p190_p9), %s584_s22, 1  ;;  %s530_s26 = smov (!%p190_p9), 1  }
   0xe   : > { %193 = sbr.rel (%p190_p9) target bundleno = 302 (0x12e), region = 40  ;;  %s531_s9 = smov (!%p190_p9), 127  }
   0xf   : > { %s418_s16 = sshll.u32 (!%p190_p9), %s584_s22, 7  ;;  %s532_s8 = smov (!%p190_p9), [#allocation3]  }
  0x10   : > { %s345_s30 = scalar_lea.hbm (!%p190_p9), %s682_s5, %s418_s16 }
  0x13   : > { %v234_v0 = vld [vmem:[%s678_s1] sm:$0xf]  ;;  %v528_v1 = vmov 0   ;;  %vm222_vm0 = vcmask 1043456   ;;  %vm223_vm1 = vcmask 138244   ;;  %s217_s13 = scalar_select %p216_p10, %s584_s22, 1  ;;  %v286_v22 = vlaneseq }
  0x14   : > { %464 = vset.pattern.permute.xlu0 %v528_v1  ;;  %465 = vset.pattern.permute.xlu1 %v528_v1  ;;  %v220_v2 = vld [vmem:[%s679_s2] sm:$0xf]  ;;  %v413_v3 = vld [vmem:[%s678_s1 + $0x8] sm:$0xf]  ;;  %v412_v4 = vld [vmem:[%s678_s1 + $0x4] sm:$0xf] }
  0x15   : > { %238 = vperm.xlu0 %464, %v234_v0   ;;  %231 = vperm.xlu1 %465, %v220_v2   ;;  %vm224_vm2 = vmor %vm223_vm1, %vm222_vm0  ;;  %v529_v5 = vmov 0.0   ;;  %s411_s14 = sshll.u32 %s217_s13, 2  ;;  %vm227_vm3 = vcmask 125952   ;;  %v280_v6 = vld [vmem:[%s680_s3] sm:$0xff]  ;;  %v415_v16 = vld [vmem:[%s680_s3 + $0x10] sm:$0xff]  ;;  %vm248_vm4 = vcmask 7168  }
  0x16   : > { %225 = vst.msk [vmem:[#allocation2] sm:$0xff] %vm224_vm2, %v529_v5  ;;  %s219_s17 = scalar_lea.vmem %s677_s0, %s411_s14  ;;  %v221_v14 = vld [vmem:[%s681_s4] sm:$0xff]  ;;  %v414_v17 = vld [vmem:[%s680_s3 + $0x8] sm:$0xff]  ;;  %v416_v18 = vld [vmem:[%s680_s3 + $0x18] sm:$0xff]  ;;  %v287_v28 = vshrl.u32 %v286_v22, 7  ;;  %s213_s14 = sand.u32 1, %s518_s19  }
  0x17   : > { %v226_v7 = vld [vmem:[%s219_s17] sm:$0xf]  ;;  %s410_s15 = sshll.u32 %s213_s14, 3  ;;  %vm331_vm5 = vcmask 130048   ;;  %s334_s6 = scalar_lea.sflag [#allocation4], %s213_s14 }
  0x18   : > { %228 = vst.msk [vmem:[#allocation2 + $0x4] sm:$0xf] %vm227_vm3, %v226_v7  ;;  %v288_v32 = vsub.s32 0, %v287_v28  ;;  %v301_v35 = vsub.s32 1, %v287_v28  ;;  %v314_v37 = vsub.s32 2, %v287_v28  ;;  %v327_v39 = vsub.s32 3, %v287_v28 }
  0x19   : > { %266 = vperm.xlu0 %464, %v413_v3   ;;  %257 = vperm.xlu1 %465, %v412_v4   ;;  %s215_s17 = scalar_lea.vmem [#allocation3], %s410_s15  ;;  %s470_s22 = sshll.u32 %s532_s8, 4  ;;  %s471_s22 = int_to_ptr.vmem [resolvable:$false] %s470_s22 }
  0x1a   : > { %s347_s23 = sshll.u32 %s215_s17, 4  ;;  %s348_s23 = int_to_ptr.vmem [resolvable:$true] %s347_s23 }
  0x1b   : > { %s466_s7 = scalar_lea.vmem %s348_s23, 128  ;;  %p473_p0 = scmp.lt.s32.totalorder %s348_s23, %s471_s22 }
  0x1c   : > { %p467_p11 = scmp.ne.s32.totalorder %s348_s23, %s466_s7 }
  0x1d   : > { %283 = vperm.xlu0 %464, %v280_v6  }
  0x1e   : > { %p468_p12 = pnand %p467_p11, %p601_p5 }
  0x1f   : > { %v235_v8 = vld [vmem:[#allocation2] sm:$0xff] }
  0x20   : > { %v254_v13 = vld [vmem:[#allocation2 + $0x4] sm:$0xf]  ;;  %p469_p13 = pneg %p468_p12 }
  0x90   : > { %v239_v9 = vpop.permute.xlu0 %238  ;;  %v232_v19 = vpop.permute.xlu1 %231 }
  0x91   : > { %v241_v10 = vmul.f32 %v239_v9, %v235_v8 }
  0x93   : > { %v243_v11 = vcombine.high %v241_v10, %v241_v10  ;;  %244 = vrot.lane.b32.xlu0 %v241_v10, %s530_s26 }
  0x94   : > { %v267_v12 = vpop.permute.xlu0 %266  ;;  %v258_v20 = vpop.permute.xlu1 %257 }
  0x95   : > { %246 = vrot.lane.b32.xlu1 %v243_v11, %s530_s26  ;;  %v269_v15 = vmul.f32 %v267_v12, %v254_v13  ;;  %v260_v26 = vmul.f32 %v258_v20, %v254_v13 }
  0x97   : > { %277 = vperm.xlu0 %464, %v221_v14  }
  0x98   : > { %v284_v21 = vpop.permute.xlu0 %283 }
  0x99   : > { %271 = vrot.lane.b32.xlu1 %v269_v15, %s531_s9  ;;  %s472_s9 = scalar_lea.vmem %s471_s22, 256 }
  0x9a   : > { %p474_p1 = scmp.lt.s32.totalorder %s472_s9, %s466_s7 }
  0x9b   : > { %309 = vperm.xlu0 %464, %v415_v16  }
  0x9c   : > { %p475_p2 = por %p474_p1, %p473_p0 }
  0x9d   : > { %296 = vperm.xlu1 %465, %v414_v17  }
  0x9e   : > { %p476_p3 = pnand %p475_p2, %p469_p13 }
  0xa1   : > { %322 = vperm.xlu1 %465, %v416_v18  }
 0x105   : > { %v245_v23 = vpop.permute.xlu0 %244 }
 0x107   : > { %v247_v24 = vpop.permute.xlu1 %246 }
 0x108   : > { %v249_v25 = vsel %vm248_vm4, %v245_v23, %v247_v24 }
 0x109   : > { %v251_v27 = vadd.f32 %v249_v25, %v232_v19 }
 0x10b   : > { %v261_v29 = vadd.f32 %v260_v26, %v251_v27  ;;  %v272_v30 = vpop.permute.xlu1 %271 }
 0x10d   : > { %v274_v31 = vadd.f32 %v272_v30, %v261_v29 }
 0x10f   : > { %v289_v33 = vrot.slane %v274_v31, %v288_v32  ;;  %v302_v38 = vrot.slane %v274_v31, %v301_v35  ;;  %v315_v43 = vrot.slane %v274_v31, %v314_v37  ;;  %v328_v47 = vrot.slane %v274_v31, %v327_v39 }
 0x111   : > { %v290_v36 = vmul.f32 %v289_v33, %v284_v21 }
 0x112   : > { %v278_v34 = vpop.permute.xlu0 %277 }
 0x113   : > { %v291_v42 = vadd.f32 %v290_v36, %v278_v34 }
 0x116   : > { %v310_v40 = vpop.permute.xlu0 %309 }
 0x117   : > { %v316_v45 = vmul.f32 %v315_v43, %v310_v40 }
 0x118   : > { %v297_v41 = vpop.permute.xlu1 %296 }
 0x119   : > { %v303_v44 = vmul.f32 %v302_v38, %v297_v41 }
 0x11b   : > { %v304_v46 = vadd.f32 %v303_v44, %v291_v42 }
 0x11c   : > { %v323_v48 = vpop.permute.xlu1 %322 }
 0x11d   : > { %v317_v49 = vadd.f32 %v316_v45, %v304_v46  ;;  %v329_v50 = vmul.f32 %v328_v47, %v323_v48 }
 0x11f   : > { %v330_v51 = vadd.f32 %v329_v50, %v317_v49 }
 0x121   : > { %332 = vst.msk [vmem:[%s215_s17] sm:$0xff] %vm331_vm5, %v330_v51 }
 0x122   : > { %479 = shalt.err (!%p476_p3)
}
 0x123   : > { %s480_s10 = scalar_lea.hbm %s345_s30, 128  ;;  %s484_s13 = scalar_lea.hbm %s682_s5, 256 }
 0x124   : > { %p481_p4 = scmp.ne.s32.totalorder %s345_s30, %s480_s10  ;;  %p485_p9 = scmp.lt.s32.totalorder %s345_s30, %s682_s5 }
 0x125   : > { %p486_p10 = scmp.lt.s32.totalorder %s484_s13, %s480_s10 }
 0x126   : > { %p482_p7 = pnand %p481_p4, %p601_p5 }
 0x127   : > { %p487_p11 = por %p486_p10, %p485_p9 }
 0x128   : > { %p483_p8 = pneg %p482_p7 }
 0x12a   : > { %p488_p12 = pnand %p487_p11, %p483_p8 }
 0x12c   : > { %491 = shalt.err (!%p488_p12)
}
 0x12d   : > { %421 = dma.vmem_to_hbm [thread:$0]  (%p601_p5), %s348_s23, 128, %s345_s30, %s334_s6  }
 0x12e PF: > { %p427_p13 = scmp.ge.s32.totalorder %s526_s21, 2  ;;  %s359_s16 = sand.u32 1, %s514_s18  }
 0x12f   : > { %s360_s17 = scalar_lea.sflag [#allocation4], %s359_s16 }
 0x130   : > { %p424_p0 = pnand %p427_p13, %p605_p6 }
 0x132   : > { %p425_p1 = pneg %p424_p0 }
 0x134   : > { %509 = dma.done.wait (%p425_p1), %s360_s17, 128  }
 0x135   : > { %511 = vsyncadd (%p425_p1), %s360_s17, 4294967168  ;;  %p15_p2 = scmp.ge.s32.totalorder %s588_s24, 4   ;;  %s685_s18 = smov %s518_s19 }
 0x136   : > { %s686_s19 = smov %s522_s20  ;;  %s687_s20 = smov %s599_s27 }
 0x137   : > { %s688_s21 = smov %s588_s24  ;;  %17 = sbr.rel (!%p15_p2) target bundleno = 3 (0x3), region = 80 }
 0x13c   :  { %365 = vsyncpa [#allocation4], 1 }
 0x13d   :  { %367 = vsyncpa [#allocation4 + $0x1], 1 }

</bundles_post_ra>
